<compile_context>
chip_gen: v6e
topology: v6e:2x2x1
jax: 0.10.0
libtpu: 0.0.40
codegen_flags: <defaults>
</compile_context>

<pallas_src>
import jax
import jax.numpy as jnp
from jax import lax
from jax.experimental import pallas as pl
from jax.experimental.pallas import tpu as pltpu

EPS = 1e-10


def _cosine_distance_kernel(x1_ref, x2_ref, wt_ref, out_ref,
                            proj_acc, w12_acc, w1_acc, w2_acc):
    n = pl.program_id(0)            # projected-hidden (output) slab
    b = pl.program_id(1)            # batch tile
    k = pl.program_id(2)            # contraction slab
    nn_steps = pl.num_programs(0)
    nb_steps = pl.num_programs(1)
    nk_steps = pl.num_programs(2)
    tb = x1_ref.shape[0]

    # Zero the per-row accumulators once, at the very first grid step.
    @pl.when((n == 0) & (b == 0) & (k == 0))
    def _init_rows():
        w12_acc[...] = jnp.zeros_like(w12_acc)
        w1_acc[...] = jnp.zeros_like(w1_acc)
        w2_acc[...] = jnp.zeros_like(w2_acc)

    # Zero the projection accumulator at the start of every contraction.
    @pl.when(k == 0)
    def _init_proj():
        proj_acc[...] = jnp.zeros_like(proj_acc)

    # x2[:, k-slab] @ W^T[k-slab, n-slab]: standard-orientation MXU matmul,
    # native input dtype, f32 accumulation.
    proj_acc[...] += jnp.dot(x2_ref[...], wt_ref[...],
                             preferred_element_type=jnp.float32)

    # Contraction complete for this (n, b): fold into the per-row sums.
    @pl.when(k == nk_steps - 1)
    def _reduce():
        x2p = proj_acc[...]                              # (TB, TN) f32
        x1f = x1_ref[...].astype(jnp.float32)            # (TB, TN) f32
        rows = pl.ds(pl.multiple_of(b * tb, tb), tb)
        w12_acc[rows, :] += jnp.sum(x1f * x2p, axis=-1, keepdims=True)
        w1_acc[rows, :] += jnp.sum(x1f * x1f, axis=-1, keepdims=True)
        w2_acc[rows, :] += jnp.sum(x2p * x2p, axis=-1, keepdims=True)

    # Very last grid step: every row sum is complete -> finalize all rows.
    @pl.when((n == nn_steps - 1) & (b == nb_steps - 1) & (k == nk_steps - 1))
    def _finalize():
        denom2 = jnp.maximum(w1_acc[...] * w2_acc[...], EPS * EPS)
        dist = -(w12_acc[...] * lax.rsqrt(denom2))       # (B_pad, 1) f32
        # Single lane-dense store for the whole call; the (B_pad,1)->(1,B_pad)
        # relayout happens exactly once.
        out_ref[...] = dist.reshape(out_ref.shape).astype(out_ref.dtype)


def _vmem_capacity_bytes():
    try:
        cap = int(pltpu.get_tpu_info().vmem_capacity_bytes)
        if cap > 0:
            return cap
    except Exception:
        pass
    return 64 << 20  # conservative fallback (v7x-sized)


def _vmem_footprint(tb, tn, tk, b_pad, itemsize):
    blocks = 2 * (tb * tn + tb * tk + tk * tn) * itemsize   # double-buffered inputs
    proj = 4 * tb * tn                                      # f32 projection scratch
    rows = 3 * 512 * b_pad                                  # (B_pad,1) f32, lane-padded
    out = 2 * 4 * b_pad
    return blocks + proj + rows + out + (2 << 20)           # + compiler headroom


def _ceil_to(x, m):
    return -(-x // m) * m


def _choose_tiles(B, H, itemsize, budget):
    """Pick (TB, TN, TK): prefer full-K (weight streamed from HBM exactly
    once) and the largest tiles that fit the per-generation VMEM budget."""
    def hidden_cands():
        c = [H]
        for t in (4096, 2048, 1024, 512, 256, 128):
            if t < H:
                c.append(t)
        return c

    tb_cands = [B] if B <= 512 else [512, 256, 128]
    for tb in tb_cands:
        b_pad = _ceil_to(B, tb)
        for tk in hidden_cands():              # full K first
            for tn in hidden_cands():
                if _vmem_footprint(tb, tn, tk, b_pad, itemsize) <= budget:
                    return tb, tn, tk
    return tb_cands[-1], min(H, 128), min(H, 128)


def cosine_distance(x1, x2, weight, *, keepdim=False,
                    block_b=None, block_n=None, block_k=None):
    """x1, x2: (B, H); weight: (H, H) nn.Linear weight (out, in). dim=1."""
    B, H = x1.shape
    assert x2.shape == (B, H) and weight.shape == (H, H)

    out_dtype = jnp.result_type(x1.dtype, x2.dtype, weight.dtype)
    itemsize = max(jnp.dtype(x1.dtype).itemsize,
                   jnp.dtype(x2.dtype).itemsize,
                   jnp.dtype(weight.dtype).itemsize)

    cap = _vmem_capacity_bytes()
    budget = max(cap - (16 << 20), 24 << 20)

    tb, tn, tk = _choose_tiles(B, H, itemsize, budget)
    if block_b is not None:
        tb = int(block_b)
    if block_n is not None:
        tn = int(block_n)
    if block_k is not None:
        tk = int(block_k)

    b_pad = _ceil_to(B, tb)
    n_pad = _ceil_to(H, tn)   # projected-hidden axis (x1 / output of W)
    k_pad = _ceil_to(H, tk)   # contraction axis (x2 / input of W)

    # Weight transposed ONCE on the wrapper side (one H^2 pass, reusable /
    # fusable for an nn.Linear parameter) so the kernel matmul needs no
    # in-kernel transpose.
    wt = weight.T   # (in = K, out = N)

    # Pad only the axes that are actually tiled (zero padding is exact here:
    # padded rows give dist = 0 and are sliced off; padded columns add 0).
    if b_pad != B or n_pad != H:
        x1 = jnp.pad(x1, ((0, b_pad - B), (0, n_pad - H)))
    if b_pad != B or k_pad != H:
        x2 = jnp.pad(x2, ((0, b_pad - B), (0, k_pad - H)))
    if k_pad != H or n_pad != H:
        wt = jnp.pad(wt, ((0, k_pad - H), (0, n_pad - H)))

    nn_steps = n_pad // tn
    nb_steps = b_pad // tb
    nk_steps = k_pad // tk

    needed = _vmem_footprint(tb, tn, tk, b_pad, itemsize)
    vmem_limit = int(min(max(needed, 32 << 20), cap - (4 << 20)))

    # Advisory cost so XLA schedules sensibly around the custom call.
    w_reads = 1 if nk_steps == 1 else nb_steps
    cost = pl.CostEstimate(
        flops=2 * b_pad * n_pad * k_pad + 8 * b_pad * n_pad,
        transcendentals=0,
        bytes_accessed=(b_pad * n_pad * jnp.dtype(x1.dtype).itemsize
                        + nn_steps * b_pad * k_pad * jnp.dtype(x2.dtype).itemsize
                        + w_reads * k_pad * n_pad * jnp.dtype(weight.dtype).itemsize
                        + b_pad * jnp.dtype(out_dtype).itemsize),
    )

    grid_spec = pltpu.PrefetchScalarGridSpec(
        num_scalar_prefetch=0,
        grid=(nn_steps, nb_steps, nk_steps),
        in_specs=[
            # x1[b-tile, n-slab]: elementwise partner of the projection.
            pl.BlockSpec((tb, tn), lambda n, b, k: (b, n)),
            # x2[b-tile, k-slab]: matmul LHS.
            pl.BlockSpec((tb, tk), lambda n, b, k: (b, k)),
            # W^T[k-slab, n-slab]: independent of the (inner) batch axis, so
            # with nk == 1 the full weight is streamed from HBM exactly once.
            pl.BlockSpec((tk, tn), lambda n, b, k: (k, n)),
            # TODO(synk): pipeline_mode=pl.Buffered(1) on the weight / x2
            # blocks would reclaim a full slab of VMEM on v7x; kept at the
            # default double buffering for lowering safety.
        ],
        # Whole lane-dense output row stays resident; written back once.
        out_specs=pl.BlockSpec((1, b_pad), lambda n, b, k: (0, 0)),
        scratch_shapes=[
            pltpu.VMEM((tb, tn), jnp.float32),     # projection accumulator
            pltpu.VMEM((b_pad, 1), jnp.float32),   # sum(x1 * x2')
            pltpu.VMEM((b_pad, 1), jnp.float32),   # sum(x1^2)
            pltpu.VMEM((b_pad, 1), jnp.float32),   # sum(x2'^2)
        ],
    )

    out = pl.pallas_call(
        _cosine_distance_kernel,
        out_shape=jax.ShapeDtypeStruct((1, b_pad), out_dtype),
        grid_spec=grid_spec,
        compiler_params=pltpu.CompilerParams(
            # All axes "arbitrary": the shared row accumulators make a naive
            # megacore split of the batch axis incorrect.
            # TODO(synk): per-core partial accumulators + epilogue would let
            # the batch axis be "parallel" on v7x's two TensorCores.
            dimension_semantics=("arbitrary", "arbitrary", "arbitrary"),
            vmem_limit_bytes=vmem_limit,
        ),
        cost_estimate=cost,
    )(x1, x2, wt)

    dist = out[0, :B]
    if keepdim:
        return dist[:, None]   # reduced dim (dim=1) kept
    return dist


def _reference(x1, x2, weight):
    x2p = x2.astype(jnp.float32) @ weight.astype(jnp.float32).T
    x1f = x1.astype(jnp.float32)
    w12 = jnp.sum(x1f * x2p, axis=1)
    w1 = jnp.sum(x1f * x1f, axis=1)
    w2 = jnp.sum(x2p * x2p, axis=1)
    return -(w12 / jnp.sqrt(jnp.maximum(w1 * w2, EPS * EPS)))


if __name__ == "__main__":
    key = jax.random.PRNGKey(0)

    # --- primary case: module-consistent small shape (batch=8, hidden=32) ---
    B, H = 8, 32
    k1, k2, kw, key = jax.random.split(key, 4)
    x1 = jax.random.normal(k1, (B, H), dtype=jnp.float32)
    x2 = jax.random.normal(k2, (B, H), dtype=jnp.float32)
    bound = 1.0 / (H ** 0.5)   # nn.Linear default init, shape (out, in)
    weight = jax.random.uniform(kw, (H, H), dtype=jnp.float32,
                                minval=-bound, maxval=bound)

    out = jax.block_until_ready(cosine_distance(x1, x2, weight, keepdim=False))
    ref = _reference(x1, x2, weight)
    assert out.shape == (B,)
    assert jnp.allclose(out, ref, atol=3e-5, rtol=3e-5), "mismatch vs reference"

    out_k = jax.block_until_ready(cosine_distance(x1, x2, weight, keepdim=True))
    assert out_k.shape == (B, 1)
    assert jnp.allclose(out_k[:, 0], ref, atol=3e-5, rtol=3e-5), "keepdim mismatch"

    # --- multi-tile case: exercises the (n, b, k) grid / accumulator paths ---
    B2, H2 = 24, 256
    k1, k2, kw, key = jax.random.split(key, 4)
    x1b = jax.random.normal(k1, (B2, H2), dtype=jnp.float32)
    x2b = jax.random.normal(k2, (B2, H2), dtype=jnp.float32)
    bound2 = 1.0 / (H2 ** 0.5)
    weight2 = jax.random.uniform(kw, (H2, H2), dtype=jnp.float32,
                                 minval=-bound2, maxval=bound2)
    out2 = jax.block_until_ready(
        cosine_distance(x1b, x2b, weight2, block_b=8, block_n=128, block_k=128))
    ref2 = _reference(x1b, x2b, weight2)
    assert out2.shape == (B2,)
    assert jnp.allclose(out2, ref2, atol=3e-5, rtol=3e-5), "tiled mismatch"

    print("KERNEL_OK")
</pallas_src>

<mosaic_0001>
module attributes {stable_mosaic.version = 11 : i64} {
  func.func @_cosine_distance_kernel(%arg0: i32, %arg1: i32, %arg2: i32, %arg3: memref<8x32xf32, #tpu.memory_space<vmem>>, %arg4: memref<8x32xf32, #tpu.memory_space<vmem>>, %arg5: memref<32x32xf32, #tpu.memory_space<vmem>>, %arg6: memref<1x8xf32, #tpu.memory_space<vmem>>, %arg7: memref<8x32xf32, #tpu.memory_space<vmem>>, %arg8: memref<8x1xf32, #tpu.memory_space<vmem>>, %arg9: memref<8x1xf32, #tpu.memory_space<vmem>>, %arg10: memref<8x1xf32, #tpu.memory_space<vmem>>) attributes {dimension_semantics = [#tpu.dimension_semantics<arbitrary>, #tpu.dimension_semantics<arbitrary>, #tpu.dimension_semantics<arbitrary>], iteration_bounds = array<i64: 1, 1, 1>, scalar_prefetch = 0 : i64, scratch_operands = 4 : i64, tpu.core_type = #tpu.core_type<tc>, window_params = [{transform_indices = @transform_0, window_bounds = array<i64: 8, 32>}, {transform_indices = @transform_1, window_bounds = array<i64: 8, 32>}, {transform_indices = @transform_2, window_bounds = array<i64: 32, 32>}, {pipeline_mode = #tpu.pipeline_mode<synchronous>, transform_indices = @transform_3, window_bounds = array<i64: 1, 8>}]} {
    %c0_i32 = arith.constant 0 : i32
    %0 = arith.cmpi eq, %arg0, %c0_i32 : i32
    %c0_i32_0 = arith.constant 0 : i32
    %1 = arith.cmpi eq, %arg1, %c0_i32_0 : i32
    %2 = arith.andi %0, %1 : i1
    %c0_i32_1 = arith.constant 0 : i32
    %3 = arith.cmpi eq, %arg2, %c0_i32_1 : i32
    %4 = arith.andi %2, %3 : i1
    %5 = arith.extui %4 : i1 to i32
    %c0_i32_2 = arith.constant 0 : i32
    %6 = arith.cmpi ne, %5, %c0_i32_2 : i32
    scf.if %6 {
      %cst_18 = arith.constant 0.000000e+00 : f32
      %26 = vector.broadcast %cst_18 : f32 to vector<8x1xf32>
      %c0_19 = arith.constant 0 : index
      %c0_20 = arith.constant 0 : index
      %27 = vector.load %arg8[%c0_19, %c0_20] : memref<8x1xf32, #tpu.memory_space<vmem>>, vector<8x1xf32>
      tpu.vector_store %arg8[%c0_19, %c0_20], %26 {strides = array<i32>} : memref<8x1xf32, #tpu.memory_space<vmem>>, vector<8x1xf32>,
      %cst_21 = arith.constant 0.000000e+00 : f32
      %28 = vector.broadcast %cst_21 : f32 to vector<8x1xf32>
      %c0_22 = arith.constant 0 : index
      %c0_23 = arith.constant 0 : index
      %29 = vector.load %arg9[%c0_22, %c0_23] : memref<8x1xf32, #tpu.memory_space<vmem>>, vector<8x1xf32>
      tpu.vector_store %arg9[%c0_22, %c0_23], %28 {strides = array<i32>} : memref<8x1xf32, #tpu.memory_space<vmem>>, vector<8x1xf32>,
      %cst_24 = arith.constant 0.000000e+00 : f32
      %30 = vector.broadcast %cst_24 : f32 to vector<8x1xf32>
      %c0_25 = arith.constant 0 : index
      %c0_26 = arith.constant 0 : index
      %31 = vector.load %arg10[%c0_25, %c0_26] : memref<8x1xf32, #tpu.memory_space<vmem>>, vector<8x1xf32>
      tpu.vector_store %arg10[%c0_25, %c0_26], %30 {strides = array<i32>} : memref<8x1xf32, #tpu.memory_space<vmem>>, vector<8x1xf32>,
    } else {
    }
    %c0_i32_3 = arith.constant 0 : i32
    %7 = arith.cmpi eq, %arg2, %c0_i32_3 : i32
    %8 = arith.extui %7 : i1 to i32
    %c0_i32_4 = arith.constant 0 : i32
    %9 = arith.cmpi ne, %8, %c0_i32_4 : i32
    scf.if %9 {
      %cst_18 = arith.constant 0.000000e+00 : f32
      %26 = vector.broadcast %cst_18 : f32 to vector<8x32xf32>
      %c0_19 = arith.constant 0 : index
      %c0_20 = arith.constant 0 : index
      %27 = vector.load %arg7[%c0_19, %c0_20] : memref<8x32xf32, #tpu.memory_space<vmem>>, vector<8x32xf32>
      tpu.vector_store %arg7[%c0_19, %c0_20], %26 {strides = array<i32>} : memref<8x32xf32, #tpu.memory_space<vmem>>, vector<8x32xf32>,
    } else {
    }
    %c0 = arith.constant 0 : index
    %c0_5 = arith.constant 0 : index
    %10 = vector.load %arg7[%c0, %c0_5] : memref<8x32xf32, #tpu.memory_space<vmem>>, vector<8x32xf32>
    %c0_6 = arith.constant 0 : index
    %c0_7 = arith.constant 0 : index
    %11 = vector.load %arg4[%c0_6, %c0_7] : memref<8x32xf32, #tpu.memory_space<vmem>>, vector<8x32xf32>
    %c0_8 = arith.constant 0 : index
    %c0_9 = arith.constant 0 : index
    %12 = vector.load %arg5[%c0_8, %c0_9] : memref<32x32xf32, #tpu.memory_space<vmem>>, vector<32x32xf32>
    %cst = arith.constant dense<0.000000e+00> : vector<8x32xf32>
    %13 = tpu.matmul %11, %12, %cst {dimension_numbers = #tpu.dot_dimension_numbers<[1], [0], [0], [1], [0, 0, 1, 1], [], []>} : vector<8x32xf32>, vector<32x32xf32>, vector<8x32xf32> -> vector<8x32xf32>
    %14 = arith.addf %10, %13 : vector<8x32xf32>
    %c0_10 = arith.constant 0 : index
    %c0_11 = arith.constant 0 : index
    %15 = vector.load %arg7[%c0_10, %c0_11] : memref<8x32xf32, #tpu.memory_space<vmem>>, vector<8x32xf32>
    tpu.vector_store %arg7[%c0_10, %c0_11], %14 {strides = array<i32>} : memref<8x32xf32, #tpu.memory_space<vmem>>, vector<8x32xf32>,
    %c0_i32_12 = arith.constant 0 : i32
    %16 = arith.cmpi eq, %arg2, %c0_i32_12 : i32
    %17 = arith.extui %16 : i1 to i32
    %c0_i32_13 = arith.constant 0 : i32
    %18 = arith.cmpi ne, %17, %c0_i32_13 : i32
    scf.if %18 {
      %c0_18 = arith.constant 0 : index
      %c0_19 = arith.constant 0 : index
      %26 = vector.load %arg7[%c0_18, %c0_19] : memref<8x32xf32, #tpu.memory_space<vmem>>, vector<8x32xf32>
      %c0_20 = arith.constant 0 : index
      %c0_21 = arith.constant 0 : index
      %27 = vector.load %arg3[%c0_20, %c0_21] : memref<8x32xf32, #tpu.memory_space<vmem>>, vector<8x32xf32>
      %c8_i32 = arith.constant 8 : i32
      %28 = arith.muli %arg1, %c8_i32 : i32
      %29 = tpu.assume_multiple %28, 8 : i32
      %30 = arith.index_cast %29 : i32 to index
      %c0_22 = arith.constant 0 : index
      %31 = vector.load %arg8[%30, %c0_22] : memref<8x1xf32, #tpu.memory_space<vmem>>, vector<8x1xf32>
      %32 = arith.mulf %27, %26 : vector<8x32xf32>
      %cst_23 = arith.constant dense<0.000000e+00> : vector<8xf32>
      %33 = vector.multi_reduction <add>, %32, %cst_23 [1] : vector<8x32xf32> to vector<8xf32>
      %34 = vector.shape_cast %33 : vector<8xf32> to vector<8x1xf32>
      %35 = arith.addf %31, %34 : vector<8x1xf32>
      %36 = arith.index_cast %29 : i32 to index
      %c0_24 = arith.constant 0 : index
      %37 = vector.load %arg8[%36, %c0_24] : memref<8x1xf32, #tpu.memory_space<vmem>>, vector<8x1xf32>
      tpu.vector_store %arg8[%36, %c0_24], %35 {strides = array<i32>} : memref<8x1xf32, #tpu.memory_space<vmem>>, vector<8x1xf32>,
      %38 = arith.index_cast %29 : i32 to index
      %c0_25 = arith.constant 0 : index
      %39 = vector.load %arg9[%38, %c0_25] : memref<8x1xf32, #tpu.memory_space<vmem>>, vector<8x1xf32>
      %40 = arith.mulf %27, %27 : vector<8x32xf32>
      %cst_26 = arith.constant dense<0.000000e+00> : vector<8xf32>
      %41 = vector.multi_reduction <add>, %40, %cst_26 [1] : vector<8x32xf32> to vector<8xf32>
      %42 = vector.shape_cast %41 : vector<8xf32> to vector<8x1xf32>
      %43 = arith.addf %39, %42 : vector<8x1xf32>
      %44 = arith.index_cast %29 : i32 to index
      %c0_27 = arith.constant 0 : index
      %45 = vector.load %arg9[%44, %c0_27] : memref<8x1xf32, #tpu.memory_space<vmem>>, vector<8x1xf32>
      tpu.vector_store %arg9[%44, %c0_27], %43 {strides = array<i32>} : memref<8x1xf32, #tpu.memory_space<vmem>>, vector<8x1xf32>,
      %46 = arith.index_cast %29 : i32 to index
      %c0_28 = arith.constant 0 : index
      %47 = vector.load %arg10[%46, %c0_28] : memref<8x1xf32, #tpu.memory_space<vmem>>, vector<8x1xf32>
      %48 = arith.mulf %26, %26 : vector<8x32xf32>
      %cst_29 = arith.constant dense<0.000000e+00> : vector<8xf32>
      %49 = vector.multi_reduction <add>, %48, %cst_29 [1] : vector<8x32xf32> to vector<8xf32>
      %50 = vector.shape_cast %49 : vector<8xf32> to vector<8x1xf32>
      %51 = arith.addf %47, %50 : vector<8x1xf32>
      %52 = arith.index_cast %29 : i32 to index
      %c0_30 = arith.constant 0 : index
      %53 = vector.load %arg10[%52, %c0_30] : memref<8x1xf32, #tpu.memory_space<vmem>>, vector<8x1xf32>
      tpu.vector_store %arg10[%52, %c0_30], %51 {strides = array<i32>} : memref<8x1xf32, #tpu.memory_space<vmem>>, vector<8x1xf32>,
    } else {
    }
    %c0_i32_14 = arith.constant 0 : i32
    %19 = arith.cmpi eq, %arg0, %c0_i32_14 : i32
    %c0_i32_15 = arith.constant 0 : i32
    %20 = arith.cmpi eq, %arg1, %c0_i32_15 : i32
    %21 = arith.andi %19, %20 : i1
    %c0_i32_16 = arith.constant 0 : i32
    %22 = arith.cmpi eq, %arg2, %c0_i32_16 : i32
    %23 = arith.andi %21, %22 : i1
    %24 = arith.extui %23 : i1 to i32
    %c0_i32_17 = arith.constant 0 : i32
    %25 = arith.cmpi ne, %24, %c0_i32_17 : i32
    scf.if %25 {
      %c0_18 = arith.constant 0 : index
      %c0_19 = arith.constant 0 : index
      %26 = vector.load %arg9[%c0_18, %c0_19] : memref<8x1xf32, #tpu.memory_space<vmem>>, vector<8x1xf32>
      %c0_20 = arith.constant 0 : index
      %c0_21 = arith.constant 0 : index
      %27 = vector.load %arg10[%c0_20, %c0_21] : memref<8x1xf32, #tpu.memory_space<vmem>>, vector<8x1xf32>
      %28 = arith.mulf %26, %27 : vector<8x1xf32>
      %cst_22 = arith.constant 9.99999968E-21 : f32
      %29 = vector.broadcast %cst_22 : f32 to vector<8x1xf32>
      %30 = arith.maximumf %28, %29 : vector<8x1xf32>
      %c0_23 = arith.constant 0 : index
      %c0_24 = arith.constant 0 : index
      %31 = vector.load %arg8[%c0_23, %c0_24] : memref<8x1xf32, #tpu.memory_space<vmem>>, vector<8x1xf32>
      %32 = math.rsqrt %30 : vector<8x1xf32>
      %33 = arith.mulf %31, %32 : vector<8x1xf32>
      %cst_25 = arith.constant 0.000000e+00 : f32
      %34 = vector.broadcast %cst_25 : f32 to vector<8x1xf32>
      %35 = arith.subf %34, %33 : vector<8x1xf32>
      %36 = vector.shape_cast %35 : vector<8x1xf32> to vector<1x8xf32>
      %c0_26 = arith.constant 0 : index
      %c0_27 = arith.constant 0 : index
      %37 = vector.load %arg6[%c0_26, %c0_27] : memref<1x8xf32, #tpu.memory_space<vmem>>, vector<1x8xf32>
      tpu.vector_store %arg6[%c0_26, %c0_27], %36 {strides = array<i32>} : memref<1x8xf32, #tpu.memory_space<vmem>>, vector<1x8xf32>,
    } else {
    }
    return
  }
  func.func @transform_0(%arg0: i32, %arg1: i32, %arg2: i32) -> (i32, i32) {
    %c0_i32 = arith.constant 0 : i32
    return %arg1, %arg0 : i32, i32
  }
  func.func @transform_1(%arg0: i32, %arg1: i32, %arg2: i32) -> (i32, i32) {
    %c0_i32 = arith.constant 0 : i32
    return %arg1, %arg2 : i32, i32
  }
  func.func @transform_2(%arg0: i32, %arg1: i32, %arg2: i32) -> (i32, i32) {
    %c0_i32 = arith.constant 0 : i32
    return %arg2, %arg0 : i32, i32
  }
  func.func @transform_3(%arg0: i32, %arg1: i32, %arg2: i32) -> (i32, i32) {
    %c0_i32 = arith.constant 0 : i32
    %c0_i32_0 = arith.constant 0 : i32
    %c0_i32_1 = arith.constant 0 : i32
    return %c0_i32, %c0_i32_0 : i32, i32
  }
}

</mosaic_0001>

<bundles_post_ra>
// kernel: tpu_custom_call.1
= control target key start
LH: loop header
LB: loop body
LE: loop exit
PB: predicated region body
PF: predicated region fallthrough
CT: control target
= control target key end

     0   :  { %8 = vsyncpa [#allocation7], 0  ;;  %s391_s0 = inlined_call_operand.hbm [shape: f32[8,32], index: 0, kind: input, shape index: {}]   ;;  %s392_s1 = inlined_call_operand.hbm [shape: f32[8,32], index: 1, kind: input, shape index: {}]   ;;  %s393_s2 = inlined_call_operand.hbm [shape: f32[32,32], index: 2, kind: input, shape index: {}]   ;;  %s394_s3 = inlined_call_operand.hbm [shape: f32[1,8], index: 3, kind: output, shape index: {}]  }
   0x1   :  { %9 = vsyncpa [#allocation10], 0 }
   0x2   :  { %10 = vsyncpa [#allocation8], 0  ;;  %s338_s12 = smov [#allocation9]   ;;  %s339_s14 = smov [#allocation6]  }
   0x3   :  { %s27_s13 = sshll.u32 %s338_s12, 4  ;;  %s17_s15 = sshll.u32 %s339_s14, 4  ;;  %s28_s13 = int_to_ptr.vmem [resolvable:$true] %s27_s13  ;;  %s18_s15 = int_to_ptr.vmem [resolvable:$true] %s17_s15 }
   0x4   :  { %s260_s16 = scalar_lea.vmem %s28_s13, 128  ;;  %p265_p1 = scmp.lt.s32.totalorder %s28_s13, %s28_s13 }
   0x5   :  { %p261_p0 = scmp.ne.s32.totalorder %s28_s13, %s260_s16  ;;  %p266_p2 = scmp.lt.s32.totalorder %s260_s16, %s260_s16 }
   0x7   :  { %p267_p3 = por %p266_p2, %p265_p1 }
   0x9   :  { %p268_p4 = pnand %p267_p3, %p261_p0 }
   0xb   :  { %271 = shalt.err (!%p268_p4)
}
   0xc   :  { %30 = dma.hbm_to_vmem [thread:$0]  %s392_s1, 128, %s28_s13, [#allocation10]  }
   0xd   :  { %s280_s19 = scalar_lea.vmem %s18_s15, 128  ;;  %p285_p6 = scmp.lt.s32.totalorder %s18_s15, %s18_s15 }
   0xe   :  { %p281_p5 = scmp.ne.s32.totalorder %s18_s15, %s280_s19  ;;  %p286_p7 = scmp.lt.s32.totalorder %s280_s19, %s280_s19 }
  0x10   :  { %p287_p8 = por %p286_p7, %p285_p6 }
  0x12   :  { %p288_p9 = pnand %p287_p8, %p281_p5 }
  0x14   :  { %291 = shalt.err (!%p288_p9)
}
  0x15   :  { %20 = dma.hbm_to_vmem [thread:$0]  %s391_s0, 128, %s18_s15, [#allocation7]  }
  0x16   :  { %s340_s22 = smov [#allocation11]  }
  0x17   :  { %s36_s23 = sshll.u32 %s340_s22, 4  ;;  %s37_s23 = int_to_ptr.vmem [resolvable:$true] %s36_s23 }
  0x18   :  { %s300_s24 = scalar_lea.vmem %s37_s23, 512  ;;  %p305_p11 = scmp.lt.s32.totalorder %s37_s23, %s37_s23 }
  0x19   :  { %p301_p10 = scmp.ne.s32.totalorder %s37_s23, %s300_s24  ;;  %p306_p12 = scmp.lt.s32.totalorder %s300_s24, %s300_s24 }
  0x1b   :  { %p307_p13 = por %p306_p12, %p305_p11 }
  0x1d   :  { %p308_p0 = pnand %p307_p13, %p301_p10 }
  0x1f   :  { %311 = shalt.err (!%p308_p0)
}
  0x20   :  { %s341_s1 = smov 128   ;;  %s342_s25 = smov 8  }
  0x21   :  { %42 = dma.hbm_to_vmem [thread:$0]  %s393_s2, 512, %s37_s23, [#allocation10], %s341_s1, %s341_s1, %s342_s25  }
  0x22   :  { %332 = dma.done.wait [#allocation7], 128  }
  0x23   :  { %333 = vsyncadd [#allocation7], 4294967168 }
  0x24   :  { %334 = dma.done.wait [#allocation10], 640  }
  0x25   :  { %335 = vsyncadd [#allocation10], 4294966656  ;;  %vm68_vm0 = vcmask 261120   ;;  %v343_v0 = vmov 0.0   ;;  %vm344_vm1 = vmmov 0   ;;  %v75_v1 = vld [vmem:[#allocation11 + $0x18] sm:$0xff]  ;;  %v197_v36 = vlaneseq }
  0x26   :  { %228 = vmatprep.subr.mxu0 %v343_v0  ;;  %236 = vmatprep.mubr.msk.f32.mxu0 %vm344_vm1, %v343_v0  ;;  %69 = vst.msk [vmem:[#allocation2] sm:$0xff] %vm68_vm0, %v343_v0  ;;  %v74_v2 = vld [vmem:[#allocation11 + $0x10] sm:$0xff]  ;;  %v73_v3 = vld [vmem:[#allocation11 + $0x8] sm:$0xff]  ;;  %v72_v4 = vld [vmem:[#allocation11] sm:$0xff]  ;;  %vm61_vm2 = vcmask 7168   ;;  %v345_v21 = vmov 0  }
  0x27   :  { %229 = vmatpush3.msra.mxu0 %v75_v1  ;;  %v71_v5 = vld [vmem:[#allocation9] sm:$0xff]  ;;  %v156_v6 = vld [vmem:[#allocation6] sm:$0xff]  ;;  %63 = vst.msk [vmem:[#allocation4] sm:$0xff] %vm61_vm2, %v343_v0  ;;  %62 = vst.msk [vmem:[#allocation3] sm:$0xff] %vm61_vm2, %v343_v0  ;;  %248 = vset.pattern.permute.xlu1 %v345_v21  ;;  %v198_v37 = vand.u32 127, %v197_v36  ;;  %v200_v38 = vshrl.u32 %v197_v36, 7 }
  0x28   :  { %230 = vmatprep.subr.mxu0 %v343_v0  ;;  %v169_v7 = vmul.f32 %v156_v6, %v156_v6  ;;  %64 = vst.msk [vmem:[#allocation5] sm:$0xff] %vm61_vm2, %v343_v0  ;;  %249 = vset.pattern.permute.xlu0 %v345_v21  ;;  %s346_s0 = smov [#allocation12]   ;;  %vm204_vm3 = vcmask 57344  }
  0x29   :  { %231 = vmatpush3.msra.mxu0 %v74_v2  ;;  %v201_v39 = vsub.s32 %v198_v37, %v200_v38  ;;  %s212_s2 = sshll.u32 %s346_s0, 4  ;;  %s213_s2 = int_to_ptr.vmem [resolvable:$true] %s212_s2 }
  0x2a   :  { %232 = vmatprep.subr.mxu0 %v343_v0  ;;  %v170_v8 = vsel %vm68_vm0, %v169_v7, 0.0  ;;  %s312_s28 = scalar_lea.vmem %s213_s2, 16  ;;  %s316_s29 = scalar_lea.vmem %s213_s2, 32 }
  0x2b   :  { %233 = vmatpush3.msra.mxu0 %v73_v3  ;;  %171 = vadd.xlane.f32.xlu0 %v170_v8  ;;  %p313_p1 = scmp.ne.s32.totalorder %s213_s2, %s312_s28  ;;  %p317_p2 = scmp.lt.s32.totalorder %s213_s2, %s213_s2 }
  0x2c   :  { %234 = vmatprep.subr.mxu0 %v343_v0  ;;  %p318_p3 = scmp.lt.s32.totalorder %s316_s29, %s312_s28 }
  0x2d   :  { %235 = vmatpush3.msra.mxu0 %v72_v4  ;;  %v70_v9 = vld [vmem:[#allocation2] sm:$0xff] }
  0x2e   :  { %237 = vmatmul.mubr.msk.f32.vlgmr.msra.gmra.mxu0 %vm68_vm0, %v71_v5  ;;  %v168_v18 = vld [vmem:[#allocation4] sm:$0xff]  ;;  %v159_v23 = vld [vmem:[#allocation3] sm:$0xff]  ;;  %p319_p4 = por %p318_p3, %p317_p2 }
  0x2f   :  { %v176_v22 = vld [vmem:[#allocation5] sm:$0xff] }
  0x30   :  { %p320_p5 = pnand %p319_p4, %p313_p1 }
  0xb4   :  { %v172_v19 = vpop.xlane.xlu0 %171 }
  0xb5   :  { %v173_v20 = vadd.f32 %v172_v19, %v168_v18 }
  0xb7   :  { %174 = vst.msk [vmem:[#allocation4] sm:$0xff] %vm61_vm2, %v173_v20 }
  0xbe   :  { %v185_v28 = vld [vmem:[#allocation4] sm:$0xff] }
  0xee   :  { %v146_v10 = vpop.f32.mrf.mxu0 }
  0xef   :  { %v150_v11 = vadd.f32 %v146_v10, %v70_v9 }
  0xf0   :  { %v238_v12 = vpop.f32.mrf.mxu0 }
  0xf1   :  { %151 = vst.msk [vmem:[#allocation2] sm:$0xff] %vm68_vm0, %v150_v11 }
  0xf8   :  { %v155_v13 = vld [vmem:[#allocation2] sm:$0xff] }
  0xf9   :  { %v177_v14 = vmul.f32 %v155_v13, %v155_v13  ;;  %v160_v15 = vmul.f32 %v156_v6, %v155_v13 }
  0xfb   :  { %v178_v16 = vsel %vm68_vm0, %v177_v14, 0.0  ;;  %v161_v17 = vsel %vm68_vm0, %v160_v15, 0.0 }
  0xfc   :  { %179 = vadd.xlane.f32.xlu0 %v178_v16  ;;  %162 = vadd.xlane.f32.xlu1 %v161_v17 }
 0x185   :  { %v180_v24 = vpop.xlane.xlu0 %179  ;;  %v163_v25 = vpop.xlane.xlu1 %162 }
 0x186   :  { %v181_v26 = vadd.f32 %v180_v24, %v176_v22  ;;  %v164_v27 = vadd.f32 %v163_v25, %v159_v23 }
 0x188   :  { %182 = vst.msk [vmem:[#allocation5] sm:$0xff] %vm61_vm2, %v181_v26  ;;  %166 = vst.msk [vmem:[#allocation3] sm:$0xff] %vm61_vm2, %v164_v27 }
 0x18f   :  { %v186_v29 = vld [vmem:[#allocation5] sm:$0xff]  ;;  %v189_v33 = vld [vmem:[#allocation3] sm:$0xff] }
 0x190   :  { %v187_v30 = vmul.f32 %v186_v29, %v185_v28 }
 0x192   :  { %v188_v31 = vmax.f32 %v187_v30, 1e-20 }
 0x194   :  { %250 = vrsqrt.f32 %v188_v31 }
 0x1a1   :  { %v251_v32 = vpop.eup %250 }
 0x1a2   :  { %v191_v34 = vmul.f32 %v251_v32, %v189_v33 }
 0x1a4   :  { %v192_v35 = vsub.f32 0.0, %v191_v34 }
 0x1a6   :  { %195 = vperm.xlu1 %248, %v192_v35  }
 0x221   :  { %v196_v40 = vpop.permute.xlu1 %195 }
 0x222   :  { %v202_v41 = vrot.slane %v196_v40, %v201_v39 }
 0x224   :  { %205 = vst.msk [vmem:[#allocation12] sm:$0x1] %vm204_vm3, %v202_v41 }
 0x225   :  { %323 = shalt.err (!%p320_p5)
}
 0x226   :  { %215 = dma.vmem_to_hbm [thread:$0]  %s213_s2, 16, %s394_s3, [#allocation8]  }
 0x227   :  { %336 = dma.done.wait [#allocation8], 16  }
 0x228   :  { %337 = vsyncadd [#allocation8], 4294967280 }
 0x229   :  { %219 = vsyncpa [#allocation7], 1 }
 0x22a   :  { %220 = vsyncpa [#allocation10], 1 }
 0x22b   :  { %221 = vsyncpa [#allocation8], 1 }

</bundles_post_ra>
